<compile_context>
chip_gen: v5e
topology: v5e:2x2
jax: 0.10.0
libtpu: 0.0.40
codegen_flags: <defaults>
</compile_context>

<pallas_src>
import functools

import jax
import jax.numpy as jnp
import numpy as np
from jax.experimental import pallas as pl
from jax.experimental import pallas as _pl_unused  # noqa: F401
from jax.experimental.pallas import tpu as pltpu  # noqa: F401  (not needed: no grid/tiling)

LANE = 128  # TPU lane width; every feature axis is zero-padded to this

# Slot indices inside the packed weight / bias slabs.
_W_IDX = dict(enc_w1=0, enc_w2=1, enc_w3=2,
              z_wh=3, z_wmu=4, z_wsig=5,
              dec_w1x=6, dec_w1z=7, dec_w2=8, dec_w3=9, dec_wmu=10, dec_wsig=11)
_B_IDX = dict(enc_b1=0, enc_b2=1, enc_b3=2,
              z_bh=3, z_bmu=4, z_bsig=5,
              dec_b1=6, dec_b2=7, dec_b3=8, dec_bmu=9, dec_bsig=10)


# ----------------------------------------------------------------------------
# Fused kernel: encoder + mean aggregation + zEncoder + rsample + decoder.
# No grid: all operands live in VMEM for the single invocation.
# ----------------------------------------------------------------------------
def _np_fused_kernel(xy_ctx_ref, xt_ref, eps_ref, w_ref, b_ref,
                     y_out_ref, ctx_out_ref, *, n_ctx, n_tgt):
    def W(name):
        return w_ref[_W_IDX[name]]                  # (LANE, LANE) bf16 tile

    def Bv(name):
        return b_ref[pl.ds(_B_IDX[name], 1), :]     # (1, LANE) f32 row

    def mm_w(a, name):
        # bf16 MXU matmul against a packed weight tile, f32 accumulation.
        return jnp.dot(a.astype(jnp.bfloat16), W(name),
                       preferred_element_type=jnp.float32)

    def mm_f32(a, b):
        return jnp.dot(a, b, preferred_element_type=jnp.float32)

    bsz = eps_ref.shape[0]
    bn = xy_ctx_ref.shape[0]                         # B * N
    bm = xt_ref.shape[0]                             # B * M

    # ---- rEncoder over all B*N context rows ---------------------------------
    xy = xy_ctx_ref[...]                             # (B*N, LANE) bf16 [x | y | 0-pad]
    h1 = jnp.maximum(mm_w(xy, "enc_w1") + Bv("enc_b1"), 0.0)
    h2 = jnp.maximum(mm_w(h1, "enc_w2") + Bv("enc_b2"), 0.0)
    r_i = mm_w(h2, "enc_w3") + Bv("enc_b3")          # (B*N, LANE) f32

    # ---- mean aggregation: block-diagonal (1/N) mask built in-kernel ---------
    row = jax.lax.broadcasted_iota(jnp.int32, (bsz, bn), 0)
    col = jax.lax.broadcasted_iota(jnp.int32, (bsz, bn), 1)
    agg = ((col >= row * n_ctx) & (col < (row + 1) * n_ctx)).astype(jnp.float32)
    agg = agg * jnp.float32(1.0 / n_ctx)             # (B, B*N)
    r = mm_f32(agg, r_i)                             # (B, LANE)

    # ---- zEncoder ------------------------------------------------------------
    hz = jnp.maximum(mm_w(r, "z_wh") + Bv("z_bh"), 0.0)
    mu_c = mm_w(hz, "z_wmu") + Bv("z_bmu")
    sigma_c = 0.1 + 0.9 * jax.nn.sigmoid(mm_w(hz, "z_wsig") + Bv("z_bsig"))
    ctx_out_ref[0, :, :] = mu_c
    ctx_out_ref[1, :, :] = sigma_c

    # ---- reparameterized sample (eps padded lanes are zero -> z pad lanes 0) --
    z = mu_c + sigma_c * eps_ref[...]                # (B, LANE) f32

    # ---- Decoder over all B*M target rows ------------------------------------
    # z contribution computed once per batch row and broadcast to target rows
    # via an in-kernel one-hot selector matmul (iota + compare, no extra DMA).
    z_contrib = mm_w(z, "dec_w1z")                   # (B, LANE)
    rows = jax.lax.broadcasted_iota(jnp.int32, (bm, bsz), 0)
    cols = jax.lax.broadcasted_iota(jnp.int32, (bm, bsz), 1)
    sel = ((rows >= cols * n_tgt) & (rows < (cols + 1) * n_tgt)).astype(jnp.float32)
    z_rows = mm_f32(sel, z_contrib)                  # (B*M, LANE)

    xt = xt_ref[...]                                 # (B*M, LANE) bf16 [x | 0-pad]
    d1 = jnp.maximum(mm_w(xt, "dec_w1x") + z_rows + Bv("dec_b1"), 0.0)
    d2 = jnp.maximum(mm_w(d1, "dec_w2") + Bv("dec_b2"), 0.0)
    d3 = jnp.maximum(mm_w(d2, "dec_w3") + Bv("dec_b3"), 0.0)
    y_out_ref[0, :, :] = mm_w(d3, "dec_wmu") + Bv("dec_bmu")
    y_out_ref[1, :, :] = 0.1 + 0.9 * jax.nn.softplus(mm_w(d3, "dec_wsig") + Bv("dec_bsig"))


# ----------------------------------------------------------------------------
# Wrapper-side packing / padding helpers.
# ----------------------------------------------------------------------------
def _pad2d(a, rows, cols, dtype=jnp.float32):
    r, c = a.shape
    return jnp.pad(a.astype(dtype), ((0, rows - r), (0, cols - c)))


def pack_params(p):
    """Zero-pad weights to (LANE, LANE) bf16 and biases to (1, LANE) f32; stack slabs."""
    enc_w1 = jnp.concatenate([p["enc_w1x"], p["enc_w1y"]], axis=0)   # (x+y, h)
    w_list = [enc_w1, p["enc_w2"], p["enc_w3"],
              p["z_wh"], p["z_wmu"], p["z_wsig"],
              p["dec_w1x"], p["dec_w1z"], p["dec_w2"], p["dec_w3"],
              p["dec_wmu"], p["dec_wsig"]]
    b_list = [p["enc_b1"], p["enc_b2"], p["enc_b3"],
              p["z_bh"], p["z_bmu"], p["z_bsig"],
              p["dec_b1"], p["dec_b2"], p["dec_b3"],
              p["dec_bmu"], p["dec_bsig"]]
    for w in w_list:
        assert w.shape[0] <= LANE and w.shape[1] <= LANE
    w_stack = jnp.stack([_pad2d(w, LANE, LANE, jnp.bfloat16) for w in w_list], axis=0)
    b_stack = jnp.concatenate([_pad2d(b, 1, LANE, jnp.float32) for b in b_list], axis=0)
    return w_stack, b_stack                          # (12,128,128) bf16, (11,128) f32


# ----------------------------------------------------------------------------
# Full forward pass (inference mode of the torch module).
# Returns (y_mu, y_sigma) of the predictive Normal plus (mu_c, sigma_c) of q_context.
# ----------------------------------------------------------------------------
@functools.partial(jax.jit, static_argnames=("y_dim", "z_dim"))
def neural_process_forward(x_context, y_context, x_target, eps, w_stack, b_stack,
                           *, y_dim, z_dim):
    B, N, x_dim = x_context.shape
    _, M, _ = x_target.shape
    yc_dim = y_context.shape[-1]

    # Flatten batch into the row axis, pad feature (lane) axis to 128, cast MXU
    # inputs to bf16 in the same op.
    xy = jnp.concatenate([x_context, y_context], axis=-1).reshape(B * N, x_dim + yc_dim)
    xy_pad = _pad2d(xy, B * N, LANE, jnp.bfloat16)
    xt_pad = _pad2d(x_target.reshape(B * M, x_dim), B * M, LANE, jnp.bfloat16)
    eps_pad = _pad2d(eps, B, LANE, jnp.float32)      # elementwise only -> stays f32

    # Advisory cost estimate so XLA schedules the surrounding ops / weight fetch well.
    mxu_flops = 2 * LANE * LANE * (3 * B * N + 4 * B + 5 * B * M)
    mask_flops = 2 * B * (B * N) * LANE + 2 * (B * M) * B * LANE
    bytes_accessed = (B * N * LANE * 2 + B * M * LANE * 2 + B * LANE * 4
                      + 12 * LANE * LANE * 2 + 11 * LANE * 4
                      + 2 * B * M * LANE * 4 + 2 * B * LANE * 4)
    cost = pl.CostEstimate(flops=mxu_flops + mask_flops,
                           transcendentals=(B + B * M) * LANE,
                           bytes_accessed=bytes_accessed)

    kernel = functools.partial(_np_fused_kernel, n_ctx=N, n_tgt=M)
    y_out, ctx_out = pl.pallas_call(
        kernel,
        out_shape=(
            jax.ShapeDtypeStruct((2, B * M, LANE), jnp.float32),  # [y_mu; y_sigma]
            jax.ShapeDtypeStruct((2, B, LANE), jnp.float32),      # [mu_c; sigma_c]
        ),
        cost_estimate=cost,
    )(xy_pad, xt_pad, eps_pad, w_stack, b_stack)

    y_mu = y_out[0, :, :y_dim].reshape(B, M, y_dim)
    y_sigma = y_out[1, :, :y_dim].reshape(B, M, y_dim)
    mu_c = ctx_out[0, :, :z_dim]
    sigma_c = ctx_out[1, :, :z_dim]
    return y_mu, y_sigma, mu_c, sigma_c


# ----------------------------------------------------------------------------
# Deterministic parameter construction and a precision-matched JAX reference.
# ----------------------------------------------------------------------------
def init_params(key, x_dim, y_dim, r_dim, z_dim, h_dim):
    def lin(k, fan_in, fan_out):
        kw, kb = jax.random.split(k)
        w = jax.random.normal(kw, (fan_in, fan_out), jnp.float32) * 0.1
        b = jax.random.normal(kb, (1, fan_out), jnp.float32) * 0.1
        return w, b

    keys = jax.random.split(key, 12)
    p = {}
    w1, p["enc_b1"] = lin(keys[0], x_dim + y_dim, h_dim)
    p["enc_w1x"], p["enc_w1y"] = w1[:x_dim], w1[x_dim:]
    p["enc_w2"], p["enc_b2"] = lin(keys[1], h_dim, h_dim)
    p["enc_w3"], p["enc_b3"] = lin(keys[2], h_dim, r_dim)
    p["z_wh"], p["z_bh"] = lin(keys[3], r_dim, r_dim)
    p["z_wmu"], p["z_bmu"] = lin(keys[4], r_dim, z_dim)
    p["z_wsig"], p["z_bsig"] = lin(keys[5], r_dim, z_dim)
    w1d, p["dec_b1"] = lin(keys[6], x_dim + z_dim, h_dim)
    p["dec_w1x"], p["dec_w1z"] = w1d[:x_dim], w1d[x_dim:]
    p["dec_w2"], p["dec_b2"] = lin(keys[7], h_dim, h_dim)
    p["dec_w3"], p["dec_b3"] = lin(keys[8], h_dim, h_dim)
    p["dec_wmu"], p["dec_bmu"] = lin(keys[9], h_dim, y_dim)
    p["dec_wsig"], p["dec_bsig"] = lin(keys[10], h_dim, y_dim)
    return p


def reference_forward(x_context, y_context, x_target, p, eps):
    """Pure-JAX reference using the same bf16-weight / f32-accumulate precision."""
    bf16 = jnp.bfloat16

    def bmm(a, w):
        return jnp.dot(a.astype(bf16), w.astype(bf16),
                       preferred_element_type=jnp.float32)

    enc_w1 = jnp.concatenate([p["enc_w1x"], p["enc_w1y"]], axis=0)
    xy = jnp.concatenate([x_context, y_context], axis=-1)
    h1 = jax.nn.relu(bmm(xy, enc_w1) + p["enc_b1"])
    h2 = jax.nn.relu(bmm(h1, p["enc_w2"]) + p["enc_b2"])
    r_i = bmm(h2, p["enc_w3"]) + p["enc_b3"]
    r = jnp.mean(r_i, axis=1)
    hz = jax.nn.relu(bmm(r, p["z_wh"]) + p["z_bh"])
    mu_c = bmm(hz, p["z_wmu"]) + p["z_bmu"]
    sigma_c = 0.1 + 0.9 * jax.nn.sigmoid(bmm(hz, p["z_wsig"]) + p["z_bsig"])
    z = mu_c + sigma_c * eps
    d1 = jax.nn.relu(bmm(x_target, p["dec_w1x"]) + bmm(z, p["dec_w1z"])[:, None, :]
                     + p["dec_b1"])
    d2 = jax.nn.relu(bmm(d1, p["dec_w2"]) + p["dec_b2"])
    d3 = jax.nn.relu(bmm(d2, p["dec_w3"]) + p["dec_b3"])
    y_mu = bmm(d3, p["dec_wmu"]) + p["dec_bmu"]
    y_sigma = 0.1 + 0.9 * jax.nn.softplus(bmm(d3, p["dec_wsig"]) + p["dec_bsig"])
    return y_mu, y_sigma, mu_c, sigma_c


if __name__ == "__main__":
    # Small, module-consistent shapes
    x_dim, y_dim, r_dim, z_dim, h_dim = 3, 2, 32, 16, 32
    batch, num_context, num_target = 2, 8, 16

    key = jax.random.PRNGKey(0)
    k_param, k_xc, k_yc, k_xt, k_eps = jax.random.split(key, 5)

    params = init_params(k_param, x_dim, y_dim, r_dim, z_dim, h_dim)
    x_context = jax.random.normal(k_xc, (batch, num_context, x_dim), jnp.float32)
    y_context = jax.random.normal(k_yc, (batch, num_context, y_dim), jnp.float32)
    x_target = jax.random.normal(k_xt, (batch, num_target, x_dim), jnp.float32)
    # reparameterization noise for q_context.rsample(), drawn deterministically
    eps = jax.random.normal(k_eps, (batch, z_dim), jnp.float32)

    # Pack/pad parameters once (outside the per-call path).
    w_stack, b_stack = pack_params(params)

    y_mu, y_sigma, mu_c, sigma_c = neural_process_forward(
        x_context, y_context, x_target, eps, w_stack, b_stack,
        y_dim=y_dim, z_dim=z_dim)
    jax.block_until_ready((y_mu, y_sigma, mu_c, sigma_c))

    ref = reference_forward(x_context, y_context, x_target, params, eps)
    np.testing.assert_allclose(np.asarray(y_mu), np.asarray(ref[0]), rtol=2e-3, atol=2e-3)
    np.testing.assert_allclose(np.asarray(y_sigma), np.asarray(ref[1]), rtol=2e-3, atol=2e-3)
    np.testing.assert_allclose(np.asarray(mu_c), np.asarray(ref[2]), rtol=2e-3, atol=2e-3)
    np.testing.assert_allclose(np.asarray(sigma_c), np.asarray(ref[3]), rtol=2e-3, atol=2e-3)

    print("KERNEL_OK")
</pallas_src>

<mosaic_0001>
module attributes {stable_mosaic.version = 11 : i64} {
  func.func @_np_fused_kernel(%arg0: memref<16x128xbf16, #tpu.memory_space<vmem>>, %arg1: memref<32x128xbf16, #tpu.memory_space<vmem>>, %arg2: memref<2x128xf32, #tpu.memory_space<vmem>>, %arg3: memref<12x128x128xbf16, #tpu.memory_space<vmem>>, %arg4: memref<11x128xf32, #tpu.memory_space<vmem>>, %arg5: memref<2x32x128xf32, #tpu.memory_space<vmem>>, %arg6: memref<2x2x128xf32, #tpu.memory_space<vmem>>) attributes {dimension_semantics = [], scalar_prefetch = 0 : i64, scratch_operands = 0 : i64, tpu.core_type = #tpu.core_type<tc>} {
    %c0 = arith.constant 0 : index
    %c0_0 = arith.constant 0 : index
    %0 = vector.load %arg0[%c0, %c0_0] : memref<16x128xbf16, #tpu.memory_space<vmem>>, vector<16x128xbf16>
    %c0_1 = arith.constant 0 : index
    %c0_2 = arith.constant 0 : index
    %c0_3 = arith.constant 0 : index
    %1 = vector.load %arg3[%c0_1, %c0_2, %c0_3] : memref<12x128x128xbf16, #tpu.memory_space<vmem>>, vector<1x128x128xbf16>
    %2 = vector.shape_cast %1 : vector<1x128x128xbf16> to vector<128x128xbf16>
    %cst = arith.constant dense<0.000000e+00> : vector<16x128xf32>
    %3 = tpu.matmul %0, %2, %cst {dimension_numbers = #tpu.dot_dimension_numbers<[1], [0], [0], [1], [0, 0, 1, 1], [], []>} : vector<16x128xbf16>, vector<128x128xbf16>, vector<16x128xf32> -> vector<16x128xf32>
    %c0_4 = arith.constant 0 : index
    %c0_5 = arith.constant 0 : index
    %4 = vector.load %arg4[%c0_4, %c0_5] : memref<11x128xf32, #tpu.memory_space<vmem>>, vector<1x128xf32>
    %5 = vector.broadcast %4 : vector<1x128xf32> to vector<16x128xf32>
    %6 = arith.addf %3, %5 : vector<16x128xf32>
    %cst_6 = arith.constant 0.000000e+00 : f32
    %7 = vector.broadcast %cst_6 : f32 to vector<16x128xf32>
    %8 = arith.maximumf %6, %7 : vector<16x128xf32>
    %9 = arith.truncf %8 : vector<16x128xf32> to vector<16x128xbf16>
    %c1 = arith.constant 1 : index
    %c0_7 = arith.constant 0 : index
    %c0_8 = arith.constant 0 : index
    %10 = vector.load %arg3[%c1, %c0_7, %c0_8] : memref<12x128x128xbf16, #tpu.memory_space<vmem>>, vector<1x128x128xbf16>
    %11 = vector.shape_cast %10 : vector<1x128x128xbf16> to vector<128x128xbf16>
    %cst_9 = arith.constant dense<0.000000e+00> : vector<16x128xf32>
    %12 = tpu.matmul %9, %11, %cst_9 {dimension_numbers = #tpu.dot_dimension_numbers<[1], [0], [0], [1], [0, 0, 1, 1], [], []>} : vector<16x128xbf16>, vector<128x128xbf16>, vector<16x128xf32> -> vector<16x128xf32>
    %c1_10 = arith.constant 1 : index
    %c0_11 = arith.constant 0 : index
    %13 = vector.load %arg4[%c1_10, %c0_11] : memref<11x128xf32, #tpu.memory_space<vmem>>, vector<1x128xf32>
    %14 = vector.broadcast %13 : vector<1x128xf32> to vector<16x128xf32>
    %15 = arith.addf %12, %14 : vector<16x128xf32>
    %cst_12 = arith.constant 0.000000e+00 : f32
    %16 = vector.broadcast %cst_12 : f32 to vector<16x128xf32>
    %17 = arith.maximumf %15, %16 : vector<16x128xf32>
    %18 = arith.truncf %17 : vector<16x128xf32> to vector<16x128xbf16>
    %c2 = arith.constant 2 : index
    %c0_13 = arith.constant 0 : index
    %c0_14 = arith.constant 0 : index
    %19 = vector.load %arg3[%c2, %c0_13, %c0_14] : memref<12x128x128xbf16, #tpu.memory_space<vmem>>, vector<1x128x128xbf16>
    %20 = vector.shape_cast %19 : vector<1x128x128xbf16> to vector<128x128xbf16>
    %cst_15 = arith.constant dense<0.000000e+00> : vector<16x128xf32>
    %21 = tpu.matmul %18, %20, %cst_15 {dimension_numbers = #tpu.dot_dimension_numbers<[1], [0], [0], [1], [0, 0, 1, 1], [], []>} : vector<16x128xbf16>, vector<128x128xbf16>, vector<16x128xf32> -> vector<16x128xf32>
    %c2_16 = arith.constant 2 : index
    %c0_17 = arith.constant 0 : index
    %22 = vector.load %arg4[%c2_16, %c0_17] : memref<11x128xf32, #tpu.memory_space<vmem>>, vector<1x128xf32>
    %23 = vector.broadcast %22 : vector<1x128xf32> to vector<16x128xf32>
    %24 = arith.addf %21, %23 : vector<16x128xf32>
    %25 = tpu.iota {dimensions = array<i32: 0>} : vector<2x16xi32>
    %26 = tpu.iota {dimensions = array<i32: 1>} : vector<2x16xi32>
    %c8_i32 = arith.constant 8 : i32
    %27 = vector.broadcast %c8_i32 : i32 to vector<2x16xi32>
    %28 = arith.muli %25, %27 : vector<2x16xi32>
    %29 = arith.cmpi sge, %26, %28 : vector<2x16xi32>
    %c1_i32 = arith.constant 1 : i32
    %30 = vector.broadcast %c1_i32 : i32 to vector<2x16xi32>
    %31 = arith.addi %25, %30 : vector<2x16xi32>
    %c8_i32_18 = arith.constant 8 : i32
    %32 = vector.broadcast %c8_i32_18 : i32 to vector<2x16xi32>
    %33 = arith.muli %31, %32 : vector<2x16xi32>
    %34 = arith.cmpi slt, %26, %33 : vector<2x16xi32>
    %35 = arith.andi %29, %34 : vector<2x16xi1>
    %36 = arith.extui %35 : vector<2x16xi1> to vector<2x16xi32>
    %37 = arith.sitofp %36 : vector<2x16xi32> to vector<2x16xf32>
    %cst_19 = arith.constant 1.250000e-01 : f32
    %38 = vector.broadcast %cst_19 : f32 to vector<2x16xf32>
    %39 = arith.mulf %37, %38 : vector<2x16xf32>
    %cst_20 = arith.constant dense<0.000000e+00> : vector<2x128xf32>
    %40 = tpu.matmul %39, %24, %cst_20 {dimension_numbers = #tpu.dot_dimension_numbers<[1], [0], [0], [1], [0, 0, 1, 1], [], []>} : vector<2x16xf32>, vector<16x128xf32>, vector<2x128xf32> -> vector<2x128xf32>
    %41 = arith.truncf %40 : vector<2x128xf32> to vector<2x128xbf16>
    %c3 = arith.constant 3 : index
    %c0_21 = arith.constant 0 : index
    %c0_22 = arith.constant 0 : index
    %42 = vector.load %arg3[%c3, %c0_21, %c0_22] : memref<12x128x128xbf16, #tpu.memory_space<vmem>>, vector<1x128x128xbf16>
    %43 = vector.shape_cast %42 : vector<1x128x128xbf16> to vector<128x128xbf16>
    %cst_23 = arith.constant dense<0.000000e+00> : vector<2x128xf32>
    %44 = tpu.matmul %41, %43, %cst_23 {dimension_numbers = #tpu.dot_dimension_numbers<[1], [0], [0], [1], [0, 0, 1, 1], [], []>} : vector<2x128xbf16>, vector<128x128xbf16>, vector<2x128xf32> -> vector<2x128xf32>
    %c3_24 = arith.constant 3 : index
    %c0_25 = arith.constant 0 : index
    %45 = vector.load %arg4[%c3_24, %c0_25] : memref<11x128xf32, #tpu.memory_space<vmem>>, vector<1x128xf32>
    %46 = vector.broadcast %45 : vector<1x128xf32> to vector<2x128xf32>
    %47 = arith.addf %44, %46 : vector<2x128xf32>
    %cst_26 = arith.constant 0.000000e+00 : f32
    %48 = vector.broadcast %cst_26 : f32 to vector<2x128xf32>
    %49 = arith.maximumf %47, %48 : vector<2x128xf32>
    %50 = arith.truncf %49 : vector<2x128xf32> to vector<2x128xbf16>
    %c4 = arith.constant 4 : index
    %c0_27 = arith.constant 0 : index
    %c0_28 = arith.constant 0 : index
    %51 = vector.load %arg3[%c4, %c0_27, %c0_28] : memref<12x128x128xbf16, #tpu.memory_space<vmem>>, vector<1x128x128xbf16>
    %52 = vector.shape_cast %51 : vector<1x128x128xbf16> to vector<128x128xbf16>
    %cst_29 = arith.constant dense<0.000000e+00> : vector<2x128xf32>
    %53 = tpu.matmul %50, %52, %cst_29 {dimension_numbers = #tpu.dot_dimension_numbers<[1], [0], [0], [1], [0, 0, 1, 1], [], []>} : vector<2x128xbf16>, vector<128x128xbf16>, vector<2x128xf32> -> vector<2x128xf32>
    %c4_30 = arith.constant 4 : index
    %c0_31 = arith.constant 0 : index
    %54 = vector.load %arg4[%c4_30, %c0_31] : memref<11x128xf32, #tpu.memory_space<vmem>>, vector<1x128xf32>
    %55 = vector.broadcast %54 : vector<1x128xf32> to vector<2x128xf32>
    %56 = arith.addf %53, %55 : vector<2x128xf32>
    %57 = arith.truncf %49 : vector<2x128xf32> to vector<2x128xbf16>
    %c5 = arith.constant 5 : index
    %c0_32 = arith.constant 0 : index
    %c0_33 = arith.constant 0 : index
    %58 = vector.load %arg3[%c5, %c0_32, %c0_33] : memref<12x128x128xbf16, #tpu.memory_space<vmem>>, vector<1x128x128xbf16>
    %59 = vector.shape_cast %58 : vector<1x128x128xbf16> to vector<128x128xbf16>
    %cst_34 = arith.constant dense<0.000000e+00> : vector<2x128xf32>
    %60 = tpu.matmul %57, %59, %cst_34 {dimension_numbers = #tpu.dot_dimension_numbers<[1], [0], [0], [1], [0, 0, 1, 1], [], []>} : vector<2x128xbf16>, vector<128x128xbf16>, vector<2x128xf32> -> vector<2x128xf32>
    %c5_35 = arith.constant 5 : index
    %c0_36 = arith.constant 0 : index
    %61 = vector.load %arg4[%c5_35, %c0_36] : memref<11x128xf32, #tpu.memory_space<vmem>>, vector<1x128xf32>
    %62 = vector.broadcast %61 : vector<1x128xf32> to vector<2x128xf32>
    %63 = arith.addf %60, %62 : vector<2x128xf32>
    %64 = arith.negf %63 : vector<2x128xf32>
    %65 = math.exp %64 : vector<2x128xf32>
    %cst_37 = arith.constant 1.000000e+00 : f32
    %66 = vector.broadcast %cst_37 : f32 to vector<2x128xf32>
    %67 = arith.addf %66, %65 : vector<2x128xf32>
    %68 = arith.divf %66, %67 : vector<2x128xf32>
    %cst_38 = arith.constant 0.899999976 : f32
    %69 = vector.broadcast %cst_38 : f32 to vector<2x128xf32>
    %70 = arith.mulf %69, %68 : vector<2x128xf32>
    %cst_39 = arith.constant 1.000000e-01 : f32
    %71 = vector.broadcast %cst_39 : f32 to vector<2x128xf32>
    %72 = arith.addf %71, %70 : vector<2x128xf32>
    %c0_40 = arith.constant 0 : index
    %c0_41 = arith.constant 0 : index
    %c0_42 = arith.constant 0 : index
    %73 = vector.load %arg6[%c0_40, %c0_41, %c0_42] : memref<2x2x128xf32, #tpu.memory_space<vmem>>, vector<1x2x128xf32>
    %74 = vector.shape_cast %73 : vector<1x2x128xf32> to vector<2x128xf32>
    %75 = vector.shape_cast %56 : vector<2x128xf32> to vector<1x2x128xf32>
    tpu.vector_store %arg6[%c0_40, %c0_41, %c0_42], %75 {strides = array<i32>} : memref<2x2x128xf32, #tpu.memory_space<vmem>>, vector<1x2x128xf32>,
    %c1_43 = arith.constant 1 : index
    %c0_44 = arith.constant 0 : index
    %c0_45 = arith.constant 0 : index
    %76 = vector.load %arg6[%c1_43, %c0_44, %c0_45] : memref<2x2x128xf32, #tpu.memory_space<vmem>>, vector<1x2x128xf32>
    %77 = vector.shape_cast %76 : vector<1x2x128xf32> to vector<2x128xf32>
    %78 = vector.shape_cast %72 : vector<2x128xf32> to vector<1x2x128xf32>
    tpu.vector_store %arg6[%c1_43, %c0_44, %c0_45], %78 {strides = array<i32>} : memref<2x2x128xf32, #tpu.memory_space<vmem>>, vector<1x2x128xf32>,
    %c0_46 = arith.constant 0 : index
    %c0_47 = arith.constant 0 : index
    %79 = vector.load %arg2[%c0_46, %c0_47] : memref<2x128xf32, #tpu.memory_space<vmem>>, vector<2x128xf32>
    %80 = arith.mulf %72, %79 : vector<2x128xf32>
    %81 = arith.addf %56, %80 : vector<2x128xf32>
    %82 = arith.truncf %81 : vector<2x128xf32> to vector<2x128xbf16>
    %c7 = arith.constant 7 : index
    %c0_48 = arith.constant 0 : index
    %c0_49 = arith.constant 0 : index
    %83 = vector.load %arg3[%c7, %c0_48, %c0_49] : memref<12x128x128xbf16, #tpu.memory_space<vmem>>, vector<1x128x128xbf16>
    %84 = vector.shape_cast %83 : vector<1x128x128xbf16> to vector<128x128xbf16>
    %cst_50 = arith.constant dense<0.000000e+00> : vector<2x128xf32>
    %85 = tpu.matmul %82, %84, %cst_50 {dimension_numbers = #tpu.dot_dimension_numbers<[1], [0], [0], [1], [0, 0, 1, 1], [], []>} : vector<2x128xbf16>, vector<128x128xbf16>, vector<2x128xf32> -> vector<2x128xf32>
    %86 = tpu.iota {dimensions = array<i32: 0>} : vector<32x2xi32>
    %87 = tpu.iota {dimensions = array<i32: 1>} : vector<32x2xi32>
    %c16_i32 = arith.constant 16 : i32
    %88 = vector.broadcast %c16_i32 : i32 to vector<32x2xi32>
    %89 = arith.muli %87, %88 : vector<32x2xi32>
    %90 = arith.cmpi sge, %86, %89 : vector<32x2xi32>
    %c1_i32_51 = arith.constant 1 : i32
    %91 = vector.broadcast %c1_i32_51 : i32 to vector<32x2xi32>
    %92 = arith.addi %87, %91 : vector<32x2xi32>
    %c16_i32_52 = arith.constant 16 : i32
    %93 = vector.broadcast %c16_i32_52 : i32 to vector<32x2xi32>
    %94 = arith.muli %92, %93 : vector<32x2xi32>
    %95 = arith.cmpi slt, %86, %94 : vector<32x2xi32>
    %96 = arith.andi %90, %95 : vector<32x2xi1>
    %97 = arith.extui %96 : vector<32x2xi1> to vector<32x2xi32>
    %98 = arith.sitofp %97 : vector<32x2xi32> to vector<32x2xf32>
    %cst_53 = arith.constant dense<0.000000e+00> : vector<32x128xf32>
    %99 = tpu.matmul %98, %85, %cst_53 {dimension_numbers = #tpu.dot_dimension_numbers<[1], [0], [0], [1], [0, 0, 1, 1], [], []>} : vector<32x2xf32>, vector<2x128xf32>, vector<32x128xf32> -> vector<32x128xf32>
    %c0_54 = arith.constant 0 : index
    %c0_55 = arith.constant 0 : index
    %100 = vector.load %arg1[%c0_54, %c0_55] : memref<32x128xbf16, #tpu.memory_space<vmem>>, vector<32x128xbf16>
    %c6 = arith.constant 6 : index
    %c0_56 = arith.constant 0 : index
    %c0_57 = arith.constant 0 : index
    %101 = vector.load %arg3[%c6, %c0_56, %c0_57] : memref<12x128x128xbf16, #tpu.memory_space<vmem>>, vector<1x128x128xbf16>
    %102 = vector.shape_cast %101 : vector<1x128x128xbf16> to vector<128x128xbf16>
    %cst_58 = arith.constant dense<0.000000e+00> : vector<32x128xf32>
    %103 = tpu.matmul %100, %102, %cst_58 {dimension_numbers = #tpu.dot_dimension_numbers<[1], [0], [0], [1], [0, 0, 1, 1], [], []>} : vector<32x128xbf16>, vector<128x128xbf16>, vector<32x128xf32> -> vector<32x128xf32>
    %104 = arith.addf %103, %99 : vector<32x128xf32>
    %c6_59 = arith.constant 6 : index
    %c0_60 = arith.constant 0 : index
    %105 = vector.load %arg4[%c6_59, %c0_60] : memref<11x128xf32, #tpu.memory_space<vmem>>, vector<1x128xf32>
    %106 = vector.broadcast %105 : vector<1x128xf32> to vector<32x128xf32>
    %107 = arith.addf %104, %106 : vector<32x128xf32>
    %cst_61 = arith.constant 0.000000e+00 : f32
    %108 = vector.broadcast %cst_61 : f32 to vector<32x128xf32>
    %109 = arith.maximumf %107, %108 : vector<32x128xf32>
    %110 = arith.truncf %109 : vector<32x128xf32> to vector<32x128xbf16>
    %c8 = arith.constant 8 : index
    %c0_62 = arith.constant 0 : index
    %c0_63 = arith.constant 0 : index
    %111 = vector.load %arg3[%c8, %c0_62, %c0_63] : memref<12x128x128xbf16, #tpu.memory_space<vmem>>, vector<1x128x128xbf16>
    %112 = vector.shape_cast %111 : vector<1x128x128xbf16> to vector<128x128xbf16>
    %cst_64 = arith.constant dense<0.000000e+00> : vector<32x128xf32>
    %113 = tpu.matmul %110, %112, %cst_64 {dimension_numbers = #tpu.dot_dimension_numbers<[1], [0], [0], [1], [0, 0, 1, 1], [], []>} : vector<32x128xbf16>, vector<128x128xbf16>, vector<32x128xf32> -> vector<32x128xf32>
    %c7_65 = arith.constant 7 : index
    %c0_66 = arith.constant 0 : index
    %114 = vector.load %arg4[%c7_65, %c0_66] : memref<11x128xf32, #tpu.memory_space<vmem>>, vector<1x128xf32>
    %115 = vector.broadcast %114 : vector<1x128xf32> to vector<32x128xf32>
    %116 = arith.addf %113, %115 : vector<32x128xf32>
    %cst_67 = arith.constant 0.000000e+00 : f32
    %117 = vector.broadcast %cst_67 : f32 to vector<32x128xf32>
    %118 = arith.maximumf %116, %117 : vector<32x128xf32>
    %119 = arith.truncf %118 : vector<32x128xf32> to vector<32x128xbf16>
    %c9 = arith.constant 9 : index
    %c0_68 = arith.constant 0 : index
    %c0_69 = arith.constant 0 : index
    %120 = vector.load %arg3[%c9, %c0_68, %c0_69] : memref<12x128x128xbf16, #tpu.memory_space<vmem>>, vector<1x128x128xbf16>
    %121 = vector.shape_cast %120 : vector<1x128x128xbf16> to vector<128x128xbf16>
    %cst_70 = arith.constant dense<0.000000e+00> : vector<32x128xf32>
    %122 = tpu.matmul %119, %121, %cst_70 {dimension_numbers = #tpu.dot_dimension_numbers<[1], [0], [0], [1], [0, 0, 1, 1], [], []>} : vector<32x128xbf16>, vector<128x128xbf16>, vector<32x128xf32> -> vector<32x128xf32>
    %c8_71 = arith.constant 8 : index
    %c0_72 = arith.constant 0 : index
    %123 = vector.load %arg4[%c8_71, %c0_72] : memref<11x128xf32, #tpu.memory_space<vmem>>, vector<1x128xf32>
    %124 = vector.broadcast %123 : vector<1x128xf32> to vector<32x128xf32>
    %125 = arith.addf %122, %124 : vector<32x128xf32>
    %cst_73 = arith.constant 0.000000e+00 : f32
    %126 = vector.broadcast %cst_73 : f32 to vector<32x128xf32>
    %127 = arith.maximumf %125, %126 : vector<32x128xf32>
    %128 = arith.truncf %127 : vector<32x128xf32> to vector<32x128xbf16>
    %c10 = arith.constant 10 : index
    %c0_74 = arith.constant 0 : index
    %c0_75 = arith.constant 0 : index
    %129 = vector.load %arg3[%c10, %c0_74, %c0_75] : memref<12x128x128xbf16, #tpu.memory_space<vmem>>, vector<1x128x128xbf16>
    %130 = vector.shape_cast %129 : vector<1x128x128xbf16> to vector<128x128xbf16>
    %cst_76 = arith.constant dense<0.000000e+00> : vector<32x128xf32>
    %131 = tpu.matmul %128, %130, %cst_76 {dimension_numbers = #tpu.dot_dimension_numbers<[1], [0], [0], [1], [0, 0, 1, 1], [], []>} : vector<32x128xbf16>, vector<128x128xbf16>, vector<32x128xf32> -> vector<32x128xf32>
    %c9_77 = arith.constant 9 : index
    %c0_78 = arith.constant 0 : index
    %132 = vector.load %arg4[%c9_77, %c0_78] : memref<11x128xf32, #tpu.memory_space<vmem>>, vector<1x128xf32>
    %133 = vector.broadcast %132 : vector<1x128xf32> to vector<32x128xf32>
    %134 = arith.addf %131, %133 : vector<32x128xf32>
    %c0_79 = arith.constant 0 : index
    %c0_80 = arith.constant 0 : index
    %c0_81 = arith.constant 0 : index
    %135 = vector.load %arg5[%c0_79, %c0_80, %c0_81] : memref<2x32x128xf32, #tpu.memory_space<vmem>>, vector<1x32x128xf32>
    %136 = vector.shape_cast %135 : vector<1x32x128xf32> to vector<32x128xf32>
    %137 = vector.shape_cast %134 : vector<32x128xf32> to vector<1x32x128xf32>
    tpu.vector_store %arg5[%c0_79, %c0_80, %c0_81], %137 {strides = array<i32>} : memref<2x32x128xf32, #tpu.memory_space<vmem>>, vector<1x32x128xf32>,
    %138 = arith.truncf %127 : vector<32x128xf32> to vector<32x128xbf16>
    %c11 = arith.constant 11 : index
    %c0_82 = arith.constant 0 : index
    %c0_83 = arith.constant 0 : index
    %139 = vector.load %arg3[%c11, %c0_82, %c0_83] : memref<12x128x128xbf16, #tpu.memory_space<vmem>>, vector<1x128x128xbf16>
    %140 = vector.shape_cast %139 : vector<1x128x128xbf16> to vector<128x128xbf16>
    %cst_84 = arith.constant dense<0.000000e+00> : vector<32x128xf32>
    %141 = tpu.matmul %138, %140, %cst_84 {dimension_numbers = #tpu.dot_dimension_numbers<[1], [0], [0], [1], [0, 0, 1, 1], [], []>} : vector<32x128xbf16>, vector<128x128xbf16>, vector<32x128xf32> -> vector<32x128xf32>
    %c10_85 = arith.constant 10 : index
    %c0_86 = arith.constant 0 : index
    %142 = vector.load %arg4[%c10_85, %c0_86] : memref<11x128xf32, #tpu.memory_space<vmem>>, vector<1x128xf32>
    %143 = vector.broadcast %142 : vector<1x128xf32> to vector<32x128xf32>
    %144 = arith.addf %141, %143 : vector<32x128xf32>
    %cst_87 = arith.constant 0.000000e+00 : f32
    %145 = vector.broadcast %cst_87 : f32 to vector<32x128xf32>
    %146 = arith.maximumf %144, %145 : vector<32x128xf32>
    %147 = vector.broadcast %cst_87 : f32 to vector<32x128xf32>
    %148 = arith.subf %144, %147 : vector<32x128xf32>
    %149 = arith.cmpf one, %148, %148 : vector<32x128xf32>
    %150 = vector.broadcast %cst_87 : f32 to vector<32x128xf32>
    %151 = arith.addf %144, %150 : vector<32x128xf32>
    %152 = math.absf %148 : vector<32x128xf32>
    %cst_88 = arith.constant 0.000000e+00 : f32
    %153 = vector.broadcast %cst_88 : f32 to vector<32x128xf32>
    %154 = arith.subf %153, %152 : vector<32x128xf32>
    %155 = math.exp %154 : vector<32x128xf32>
    %156 = math.log1p %155 : vector<32x128xf32>
    %157 = arith.addf %146, %156 : vector<32x128xf32>
    %158 = arith.select %149, %151, %157 : vector<32x128xi1>, vector<32x128xf32>
    %cst_89 = arith.constant 0.899999976 : f32
    %159 = vector.broadcast %cst_89 : f32 to vector<32x128xf32>
    %160 = arith.mulf %159, %158 : vector<32x128xf32>
    %cst_90 = arith.constant 1.000000e-01 : f32
    %161 = vector.broadcast %cst_90 : f32 to vector<32x128xf32>
    %162 = arith.addf %161, %160 : vector<32x128xf32>
    %c1_91 = arith.constant 1 : index
    %c0_92 = arith.constant 0 : index
    %c0_93 = arith.constant 0 : index
    %163 = vector.load %arg5[%c1_91, %c0_92, %c0_93] : memref<2x32x128xf32, #tpu.memory_space<vmem>>, vector<1x32x128xf32>
    %164 = vector.shape_cast %163 : vector<1x32x128xf32> to vector<32x128xf32>
    %165 = vector.shape_cast %162 : vector<32x128xf32> to vector<1x32x128xf32>
    tpu.vector_store %arg5[%c1_91, %c0_92, %c0_93], %165 {strides = array<i32>} : memref<2x32x128xf32, #tpu.memory_space<vmem>>, vector<1x32x128xf32>,
    return
  }
}

</mosaic_0001>

<bundles_post_ra>
// kernel: neural_process_forward.1
= control target key start
LH: loop header
LB: loop body
LE: loop exit
PB: predicated region body
PF: predicated region fallthrough
CT: control target
= control target key end

     0   :  { %12 = vsyncpa [#allocation3], 0  ;;  %s1891_s24 = smov [#allocation2]   ;;  %s1892_s26 = smov 64   ;;  %s2046_s0 = inlined_call_operand.vmem [shape: bf16[16,128], index: 0, kind: input, shape index: {}]   ;;  %s2047_s1 = inlined_call_operand.vmem [shape: bf16[32,128], index: 1, kind: input, shape index: {}]   ;;  %s2048_s2 = inlined_call_operand.vmem [shape: f32[2,128], index: 2, kind: input, shape index: {}]   ;;  %s2049_s3 = inlined_call_operand.hbm [shape: bf16[12,128,128], index: 3, kind: input, shape index: {}]   ;;  %s2050_s4 = inlined_call_operand.vmem [shape: f32[11,128], index: 4, kind: input, shape index: {}]   ;;  %s2051_s5 = inlined_call_operand.vmem [shape: f32[2,32,128], index: 5, kind: output, shape index: {0}]   ;;  %s2052_s6 = inlined_call_operand.vmem [shape: f32[2,2,128], index: 6, kind: output, shape index: {1}]  }
   0x1   :  { %s23_s23 = sshll.u32 %s2049_s3, 4  ;;  %s25_s25 = sshll.u32 %s1891_s24, 4  ;;  %s24_s23 = int_to_ptr.hbm [resolvable:$true] %s23_s23  ;;  %s26_s25 = int_to_ptr.vmem [resolvable:$true] %s25_s25 }
   0x2   :  { %s1893_s27 = smov 4  }
   0x3   :  { %31 = dma.hbm_to_vmem [thread:$0]  %s24_s23, 12288, %s26_s25, [#allocation3], %s1892_s26, %s1892_s26, %s1893_s27  }
   0x4   :  { %1889 = dma.done.wait [#allocation3], 12288  }
   0x5   :  { %1890 = vsyncadd [#allocation3], 4294955008  ;;  %v1739_v0 = vld [vmem:[#allocation2 + $0x38] sm:$0xff]  ;;  %v1738_v1 = vld [vmem:[#allocation2 + $0x30] sm:$0xff]  ;;  %v294_v43 = vlaneseq  ;;  %v1894_v56 = vmov 0.0   ;;  %vm307_vm3 = vcmask 130048  }
   0x6   :  { %112 = vmatpush.bf16.msra.mxu0 %v1739_v0  ;;  %v1747_v2 = vld [vmem:[#allocation2 + $0x78] sm:$0xff]  ;;  %v1737_v3 = vld [vmem:[#allocation2 + $0x28] sm:$0xff]  ;;  %v1746_v4 = vld [vmem:[#allocation2 + $0x70] sm:$0xff]  ;;  %vm719_vm11 = vcmask 1041408   ;;  %vm706_vm12 = vcmask 15360  }
   0x7   :  { %196 = vmatpush.bf16.msra.mxu1 %v1747_v2  ;;  %v1745_v5 = vld [vmem:[#allocation2 + $0x68] sm:$0xff]  ;;  %v1736_v6 = vld [vmem:[#allocation2 + $0x20] sm:$0xff]  ;;  %v1735_v8 = vld [vmem:[#allocation2 + $0x18] sm:$0xff]  ;;  %v1942_v45 = vshrl.u32 %v294_v43, 7  ;;  %v1945_v49 = vand.u32 127, %v294_v43 }
   0x8   :  { %v1744_v7 = vld [vmem:[#allocation2 + $0x60] sm:$0xff]  ;;  %v1734_v9 = vld [vmem:[#allocation2 + $0x10] sm:$0xff]  ;;  %v1733_v10 = vld [vmem:[#allocation2 + $0x8] sm:$0xff] }
   0x9   :  { %v1732_v11 = vld [vmem:[#allocation2] sm:$0xff]  ;;  %v1743_v13 = vld [vmem:[#allocation2 + $0x58] sm:$0xff]  ;;  %v1742_v14 = vld [vmem:[#allocation2 + $0x50] sm:$0xff]  ;;  %v300_v47 = vadd.s32 1, %v1942_v45  ;;  %v298_v50 = vmul.u32 8, %v1942_v45 }
   0xa   :  { %113 = vmatpush.bf16.msra.mxu0 %v1738_v1  ;;  %v1731_v12 = vld [vmem:[%s2046_s0] sm:$0xff]  ;;  %v1741_v15 = vld [vmem:[#allocation2 + $0x48] sm:$0xff]  ;;  %v1755_v17 = vld [vmem:[#allocation2 + $0xb8] sm:$0xff] }
   0xb   :  { %197 = vmatpush.bf16.msra.mxu1 %v1746_v4  ;;  %v1740_v16 = vld [vmem:[#allocation2 + $0x40] sm:$0xff]  ;;  %280 = vmatpush.bf16.msra.mxu2 %v1755_v17  ;;  %v1754_v18 = vld [vmem:[#allocation2 + $0xb0] sm:$0xff]  ;;  %v1753_v19 = vld [vmem:[#allocation2 + $0xa8] sm:$0xff]  ;;  %v301_v51 = vmul.u32 8, %v300_v47  ;;  %vm299_vm0 = vcmp.ge.s32.totalorder %v1945_v49, %v298_v50 }
   0xc   :  { %v1752_v20 = vld [vmem:[#allocation2 + $0xa0] sm:$0xff]  ;;  %v1751_v29 = vld [vmem:[#allocation2 + $0x98] sm:$0xff]  ;;  %v1750_v30 = vld [vmem:[#allocation2 + $0x90] sm:$0xff] }
   0xd   :  { %v1834_v22 = vld [vmem:[%s2050_s4] ss:$0 sm:$0xff]  ;;  %v1749_v31 = vld [vmem:[#allocation2 + $0x88] sm:$0xff]  ;;  %v1835_v34 = vld [vmem:[%s2050_s4 + $0x1] ss:$0 sm:$0xff]  ;;  %vm302_vm1 = vcmp.lt.s32.totalorder %v1945_v49, %v301_v51 }
   0xe   :  { %114 = vmatpush.bf16.msra.mxu0 %v1737_v3  ;;  %v1748_v32 = vld [vmem:[#allocation2 + $0x80] sm:$0xff]  ;;  %v1763_v41 = vld [vmem:[#allocation2 + $0xf8] sm:$0xff]  ;;  %v1762_v42 = vld [vmem:[#allocation2 + $0xf0] sm:$0xff] }
   0xf   :  { %198 = vmatpush.bf16.msra.mxu1 %v1745_v5  ;;  %281 = vmatpush.bf16.msra.mxu2 %v1754_v18  ;;  %v1761_v44 = vld [vmem:[#allocation2 + $0xe8] sm:$0xff]  ;;  %v1760_v46 = vld [vmem:[#allocation2 + $0xe0] sm:$0xff]  ;;  %v1759_v48 = vld [vmem:[#allocation2 + $0xd8] sm:$0xff] }
  0x10   :  { %399 = vmatpush.bf16.msra.mxu3 %v1763_v41  ;;  %v1758_v53 = vld [vmem:[#allocation2 + $0xd0] sm:$0xff]  ;;  %vm303_vm2 = vmand %vm299_vm0, %vm302_vm1  ;;  %v1757_v54 = vld [vmem:[#allocation2 + $0xc8] sm:$0xff] }
  0x11   :  { %v1836_v55 = vld [vmem:[%s2050_s4 + $0x2] ss:$0 sm:$0xff]  ;;  %v1418_v57 = vsel %vm303_vm2, 1.0, %v1894_v56  ;;  %v1771_v63 = vld [vmem:[#allocation2 + $0x138] sm:$0xff]  ;;  %v1770_v1 = vld [vmem:[#allocation2 + $0x130] sm:$0xff] }
  0x12   :  { %115 = vmatpush.bf16.msra.mxu0 %v1736_v6  ;;  %v306_v60 = vmul.f32 0.125, %v1418_v57  ;;  %v1756_v62 = vld [vmem:[#allocation2 + $0xc0] sm:$0xff]  ;;  %v1779_v0 = vld [vmem:[#allocation2 + $0x178] sm:$0xff]  ;;  %v1778_v2 = vld [vmem:[#allocation2 + $0x170] sm:$0xff] }
  0x13   :  { %199 = vmatpush.bf16.msra.mxu1 %v1744_v7  ;;  %282 = vmatpush.bf16.msra.mxu2 %v1753_v19  ;;  %v1769_v3 = vld [vmem:[#allocation2 + $0x128] sm:$0xff]  ;;  %v1768_v5 = vld [vmem:[#allocation2 + $0x120] sm:$0xff]  ;;  %v1767_v7 = vld [vmem:[#allocation2 + $0x118] sm:$0xff] }
  0x14   :  { %400 = vmatpush.bf16.msra.mxu3 %v1762_v42  ;;  %v1777_v4 = vld [vmem:[#allocation2 + $0x168] sm:$0xff]  ;;  %v1776_v6 = vld [vmem:[#allocation2 + $0x160] sm:$0xff] }
  0x15   :  { %v1837_v17 = vld [vmem:[%s2050_s4 + $0x3] ss:$0 sm:$0xff] }
  0x16   :  { %116 = vmatpush.bf16.msra.mxu0 %v1735_v8  ;;  %v1775_v8 = vld [vmem:[#allocation2 + $0x158] sm:$0xff] }
  0x17   :  { %200 = vmatpush.bf16.msra.mxu1 %v1743_v13  ;;  %283 = vmatpush.bf16.msra.mxu2 %v1752_v20  ;;  %v1765_v13 = vld [vmem:[#allocation2 + $0x108] sm:$0xff] }
  0x18   :  { %401 = vmatpush.bf16.msra.mxu3 %v1761_v44 }
  0x1a   :  { %117 = vmatpush.bf16.msra.mxu0 %v1734_v9  ;;  %v1766_v9 = vld [vmem:[#allocation2 + $0x110] sm:$0xff] }
  0x1b   :  { %201 = vmatpush.bf16.msra.mxu1 %v1742_v14  ;;  %284 = vmatpush.bf16.msra.mxu2 %v1751_v29  ;;  %v1773_v14 = vld [vmem:[#allocation2 + $0x148] sm:$0xff]  ;;  %v1838_v29 = vld [vmem:[%s2050_s4 + $0x4] ss:$0 sm:$0xff] }
  0x1c   :  { %402 = vmatpush.bf16.msra.mxu3 %v1760_v46 }
  0x1e   :  { %118 = vmatpush.bf16.msra.mxu0 %v1733_v10  ;;  %v1774_v10 = vld [vmem:[#allocation2 + $0x150] sm:$0xff] }
  0x1f   :  { %202 = vmatpush.bf16.msra.mxu1 %v1741_v15  ;;  %285 = vmatpush.bf16.msra.mxu2 %v1750_v30  ;;  %v1764_v15 = vld [vmem:[#allocation2 + $0x100] sm:$0xff] }
  0x20   :  { %403 = vmatpush.bf16.msra.mxu3 %v1759_v48  ;;  %v1839_v30 = vld [vmem:[%s2050_s4 + $0x5] ss:$0 sm:$0xff] }
  0x22   :  { %119 = vmatpush.bf16.msra.mxu0 %v1732_v11 }
  0x23   :  { %203 = vmatpush.bf16.msra.mxu1 %v1740_v16  ;;  %286 = vmatpush.bf16.msra.mxu2 %v1749_v31  ;;  %v1772_v16 = vld [vmem:[#allocation2 + $0x140] sm:$0xff]  ;;  %v1781_v31 = vld [vmem:[#allocation2 + $0x1c8] sm:$0xff] }
  0x24   :  { %404 = vmatpush.bf16.msra.mxu3 %v1758_v53 }
  0x25   :  { %120 = vmatmul.bf16.vlgmr.msra.gmra.mxu0 %v1731_v12 }
  0x27   :  { %287 = vmatpush.bf16.msra.mxu2 %v1748_v32  ;;  %561 = vmatpush.bf16.msrb.mxu1 %v1779_v0  ;;  %v680_v0 = vadd.s32 8, %v1942_v45 }
  0x28   :  { %405 = vmatpush.bf16.msra.mxu3 %v1757_v54 }
  0x2b   :  { %562 = vmatpush.bf16.msrb.mxu1 %v1778_v2  ;;  %v1797_v2 = vld [vmem:[#allocation2 + $0x1b8] sm:$0xff] }
  0x2c   :  { %406 = vmatpush.bf16.msra.mxu3 %v1756_v62  ;;  %v683_v62 = vmul.u32 16, %v1945_v49 }
  0x2e   :  { %vm684_vm8 = vcmp.ge.s32.totalorder %v1942_v45, %v683_v62  ;;  %vm685_vm13 = vcmp.ge.s32.totalorder %v680_v0, %v683_v62 }
  0x2f   :  { %563 = vmatpush.bf16.msrb.mxu1 %v1777_v4  ;;  %v681_v4 = vadd.s32 16, %v1942_v45 }
  0x31   :  { %vm686_vm0 = vcmp.ge.s32.totalorder %v681_v4, %v683_v62 }
  0x33   :  { %564 = vmatpush.bf16.msrb.mxu1 %v1776_v6  ;;  %v1795_v6 = vld [vmem:[#allocation2 + $0x1a8] sm:$0xff] }
  0x37   :  { %565 = vmatpush.bf16.msrb.mxu1 %v1775_v8  ;;  %v1794_v8 = vld [vmem:[#allocation2 + $0x1a0] sm:$0xff] }
  0x3b   :  { %566 = vmatpush.bf16.msrb.mxu1 %v1774_v10 }
  0x3f   :  { %567 = vmatpush.bf16.msrb.mxu1 %v1773_v14  ;;  %v1791_v14 = vld [vmem:[#allocation2 + $0x188] sm:$0xff] }
  0x43   :  { %568 = vmatpush.bf16.msrb.mxu1 %v1772_v16  ;;  %v1789_v16 = vld [vmem:[%s2047_s1 + $0x8] sm:$0xff] }
  0xa2   :  { %v121_v21 = vpop.f32.mrf.mxu0 }
  0xa3   :  { %v122_v23 = vadd.f32 %v1834_v22, %v121_v21 }
  0xa5   :  { %v126_v26 = vmax.f32 %v122_v23, 0.0  ;;  %v1787_v23 = vld [vmem:[#allocation2 + $0x1f8] sm:$0xff] }
  0xa6   :  { %667 = vmatpush.bf16.msrb.mxu2 %v1787_v23 }
  0xaa   :  { %v123_v24 = vpop.f32.mrf.mxu0 }
  0xab   :  { %v124_v25 = vadd.f32 %v1834_v22, %v123_v24  ;;  %v1786_v24 = vld [vmem:[#allocation2 + $0x1f0] sm:$0xff] }
  0xac   :  { %668 = vmatpush.bf16.msrb.mxu2 %v1786_v24  ;;  %v1799_v24 = vld [vmem:[#allocation2 + $0x208] sm:$0xff] }
  0xad   :  { %v127_v27 = vmax.f32 %v124_v25, 0.0  ;;  %v1785_v25 = vld [vmem:[#allocation2 + $0x1e8] sm:$0xff] }
  0xaf   :  { %v128_v28 = vpack.c.bf16 %v127_v27, %v126_v26  ;;  %v1784_v26 = vld [vmem:[#allocation2 + $0x1e0] sm:$0xff]  ;;  %v1783_v27 = vld [vmem:[#allocation2 + $0x1d8] sm:$0xff] }
  0xb0   :  { %669 = vmatpush.bf16.msrb.mxu2 %v1785_v25  ;;  %v1798_v25 = vld [vmem:[#allocation2 + $0x200] sm:$0xff] }
  0xb1   :  { %204 = vmatmul.bf16.vlgmr.msra.gmra.mxu1 %v128_v28  ;;  %v1782_v28 = vld [vmem:[#allocation2 + $0x1d0] sm:$0xff] }
  0xb4   :  { %670 = vmatpush.bf16.msrb.mxu2 %v1784_v26 }
  0xb8   :  { %671 = vmatpush.bf16.msrb.mxu2 %v1783_v27 }
  0xbc   :  { %672 = vmatpush.bf16.msrb.mxu2 %v1782_v28 }
  0xc0   :  { %673 = vmatpush.bf16.msrb.mxu2 %v1781_v31 }
 0x12e   :  { %v205_v33 = vpop.f32.mrf.mxu1 }
 0x12f   :  { %v206_v35 = vadd.f32 %v1835_v34, %v205_v33 }
 0x131   :  { %v210_v38 = vmax.f32 %v206_v35, 0.0 }
 0x136   :  { %v207_v36 = vpop.f32.mrf.mxu1 }
 0x137   :  { %v208_v37 = vadd.f32 %v1835_v34, %v207_v36  ;;  %v1780_v36 = vld [vmem:[#allocation2 + $0x1c0] sm:$0xff] }
 0x138   :  { %674 = vmatpush.bf16.msrb.mxu2 %v1780_v36 }
 0x139   :  { %v211_v39 = vmax.f32 %v208_v37, 0.0 }
 0x13b   :  { %v212_v40 = vpack.c.bf16 %v211_v39, %v210_v38 }
 0x13d   :  { %288 = vmatmul.bf16.vlgmr.msra.gmra.mxu2 %v212_v40 }
 0x1c0   :  { %v289_v52 = vpop.f32.mrf.mxu2 }
 0x1c1   :  { %v290_v61 = vadd.f32 %v1836_v55, %v289_v52 }
 0x1c8   :  { %v291_v58 = vpop.f32.mrf.mxu2 }
 0x1c9   :  { %v292_v59 = vadd.f32 %v1836_v55, %v291_v58  ;;  %v598_v55 = vld [vmem:[%s2048_s2] sm:$0x3] }
 0x1cb   :  { %325 = vmatpush.msrb.mxu0 %v292_v59 }
 0x1cd   :  { %326 = vmatpush.msrb.mxu0 %v290_v61  ;;  %v688_v61 = vadd.s32 1, %v1945_v49  ;;  %v1796_v49 = vld [vmem:[#allocation2 + $0x1b0] sm:$0xff] }
 0x1ce   :  { %1419 = vmatmul.msk.f32.vlgmr.msrb.gmra.mxu0 %vm307_vm3, %v306_v60 }
 0x1cf   :  { %481 = vmatpush.bf16.msra.mxu0 %v1771_v63  ;;  %v689_v63 = vmul.u32 16, %v688_v61  ;;  %v1820_v61 = vld [vmem:[#allocation2 + $0x2b0] sm:$0xff] }
 0x1d1   :  { %vm690_vm9 = vcmp.lt.s32.totalorder %v1942_v45, %v689_v63  ;;  %vm691_vm14 = vcmp.lt.s32.totalorder %v680_v0, %v689_v63  ;;  %vm692_vm1 = vcmp.lt.s32.totalorder %v681_v4, %v689_v63  ;;  %v1819_v0 = vld [vmem:[#allocation2 + $0x2a8] sm:$0xff]  ;;  %v1818_v4 = vld [vmem:[#allocation2 + $0x2a0] sm:$0xff] }
 0x1d2   :  { %vm694_vm10 = vmand %vm684_vm8, %vm690_vm9 }
 0x1d3   :  { %482 = vmatpush.bf16.msra.mxu0 %v1770_v1  ;;  %v1550_v1 = vsel %vm694_vm10, 1.0, %v1894_v56  ;;  %vm695_vm15 = vmand %vm685_vm13, %vm691_vm14 }
 0x1d4   :  { %vm696_vm2 = vmand %vm686_vm0, %vm692_vm1 }
 0x1d5   :  { %v1552_v10 = vsel %vm696_vm2, 1.0, %v1894_v56 }
 0x1d7   :  { %483 = vmatpush.bf16.msra.mxu0 %v1769_v3 }
 0x1db   :  { %484 = vmatpush.bf16.msra.mxu0 %v1768_v5  ;;  %v1551_v5 = vsel %vm695_vm15, 1.0, %v1894_v56 }
 0x1df   :  { %485 = vmatpush.bf16.msra.mxu0 %v1767_v7 }
 0x1e3   :  { %486 = vmatpush.bf16.msra.mxu0 %v1766_v9  ;;  %v682_v9 = vadd.s32 24, %v1942_v45  ;;  %v1788_v45 = vld [vmem:[%s2047_s1] sm:$0xff] }
 0x1e5   :  { %vm687_vm3 = vcmp.ge.s32.totalorder %v682_v9, %v683_v62  ;;  %v1828_v62 = vld [vmem:[#allocation2 + $0x2f0] sm:$0xff] }
 0x1e7   :  { %487 = vmatpush.bf16.msra.mxu0 %v1765_v13 }
 0x1eb   :  { %488 = vmatpush.bf16.msra.mxu0 %v1764_v15  ;;  %v1790_v15 = vld [vmem:[#allocation2 + $0x180] sm:$0xff] }
 0x24b   :  { %v328_v11 = vpop.f32.mrf.mxu0 }
 0x24c   :  { %v331_v12 = vpack.c.bf16 %v328_v11, %v328_v11  ;;  %v1793_v11 = vld [vmem:[#allocation2 + $0x198] sm:$0xff] }
 0x24e   :  { %407 = vmatmul.bf16.vlgmr.msra.gmra.mxu3 %v331_v12  ;;  %v1792_v12 = vld [vmem:[#allocation2 + $0x190] sm:$0xff] }
 0x2d1   :  { %v408_v18 = vpop.f32.mrf.mxu3 }
 0x2d2   :  { %v409_v19 = vadd.f32 %v1837_v17, %v408_v18  ;;  %v1805_v17 = vld [vmem:[#allocation2 + $0x238] sm:$0xff]  ;;  %v1804_v18 = vld [vmem:[#allocation2 + $0x230] sm:$0xff] }
 0x2d3   :  { %931 = vmatpush.bf16.msrb.mxu0 %v1805_v17  ;;  %v1816_v17 = vld [vmem:[#allocation2 + $0x290] sm:$0xff] }
 0x2d4   :  { %v412_v20 = vmax.f32 %v409_v19, 0.0  ;;  %v1802_v19 = vld [vmem:[#allocation2 + $0x220] sm:$0xff] }
 0x2d6   :  { %v413_v21 = vpack.c.bf16 %v412_v20, %v412_v20 }
 0x2d7   :  { %932 = vmatpush.bf16.msrb.mxu0 %v1804_v18  ;;  %v1824_v18 = vld [vmem:[#allocation2 + $0x2d0] sm:$0xff] }
 0x2d8   :  { %489 = vmatmul.bf16.vlgmr.msra.gmra.mxu0 %v413_v21  ;;  %569 = vmatmul.bf16.vlgmr.msrb.gmra.mxu1 %v413_v21  ;;  %v1801_v21 = vld [vmem:[#allocation2 + $0x218] sm:$0xff] }
 0x2d9   :  { %v410_v22 = vpop.f32.mrf.mxu3 }
 0x2da   :  { %v1800_v22 = vld [vmem:[#allocation2 + $0x210] sm:$0xff] }
 0x355   :  { %v490_v32 = vpop.f32.mrf.mxu0  ;;  %v570_v33 = vpop.f32.mrf.mxu1 }
 0x356   :  { %v491_v34 = vadd.f32 %v1838_v29, %v490_v32  ;;  %v571_v35 = vadd.f32 %v1839_v30, %v570_v33  ;;  %v1813_v29 = vld [vmem:[#allocation2 + $0x278] sm:$0xff]  ;;  %v1812_v30 = vld [vmem:[#allocation2 + $0x270] sm:$0xff]  ;;  %v1840_v32 = vld [vmem:[%s2050_s4 + $0x6] ss:$0 sm:$0xff] }
 0x357   :  { %1023 = vmatpush.bf16.msra.mxu1 %v1813_v29  ;;  %v1811_v33 = vld [vmem:[#allocation2 + $0x268] sm:$0xff] }
 0x358   :  { %595 = vst [vmem:[%s2052_s6] sm:$0x3] %v491_v34  ;;  %v1516_v37 = vmul.f32 -1.442695, %v571_v35 }
 0x35a   :  { %1845 = vpow2.f32 %v1516_v37 }
 0x35b   :  { %1024 = vmatpush.bf16.msra.mxu1 %v1812_v30 }
 0x35d   :  { %v492_v38 = vpop.f32.mrf.mxu0  ;;  %v572_v39 = vpop.f32.mrf.mxu1 }
 0x35e   :  { %v1810_v38 = vld [vmem:[#allocation2 + $0x260] sm:$0xff] }
 0x35f   :  { %1025 = vmatpush.bf16.msra.mxu1 %v1811_v33 }
 0x360   :  { %v1846_v40 = vpop.eup %1845 }
 0x361   :  { %v577_v41 = vadd.f32 1.0, %v1846_v40 }
 0x363   :  { %1847 = vrcp.f32 %v577_v41  ;;  %v589_v46 = vand.u32 2147483648, %v577_v41  ;;  %v587_v48 = vand.u32 2147483647, %v577_v41  ;;  %vm583_vm5 = vweird.f32 %v577_v41  ;;  %1026 = vmatpush.bf16.msra.mxu1 %v1810_v38  ;;  %v1844_v38 = vld [vmem:[%s2050_s4 + $0xa] ss:$0 sm:$0xff] }
 0x365   :  { %v590_v51 = vor.u32 1.1754944e-38, %v589_v46  ;;  %vm588_vm7 = vcmp.eq.f32.partialorder %v587_v48, 8.507059e+37 }
 0x369   :  { %v1848_v42 = vpop.eup %1847 }
 0x36a   :  { %v579_v43 = vmul.f32 %v1848_v42, %v577_v41  ;;  %vm584_vm4 = vweird.f32 %v1848_v42 }
 0x36b   :  { %vm585_vm6 = vmor %vm583_vm5, %vm584_vm4  ;;  %vm693_vm4 = vcmp.lt.s32.totalorder %v682_v9, %v689_v63  ;;  %v1841_v63 = vld [vmem:[%s2050_s4 + $0x7] ss:$0 sm:$0xff] }
 0x36c   :  { %v580_v44 = vsub.f32 1.0, %v579_v43  ;;  %vm697_vm5 = vmand %vm687_vm3, %vm693_vm4 }
 0x36d   :  { %v1553_v13 = vsel %vm697_vm5, 1.0, %v1894_v56  ;;  %v1803_v56 = vld [vmem:[#allocation2 + $0x228] sm:$0xff] }
 0x36e   :  { %v581_v47 = vmul.f32 %v1848_v42, %v580_v44  ;;  %933 = vmatpush.bf16.msrb.mxu0 %v1803_v56  ;;  %v1815_v56 = vld [vmem:[#allocation2 + $0x288] sm:$0xff] }
 0x370   :  { %v582_v50 = vadd.f32 %v1848_v42, %v581_v47 }
 0x372   :  { %v586_v52 = vsel %vm585_vm6, %v1848_v42, %v582_v50  ;;  %934 = vmatpush.bf16.msrb.mxu0 %v1802_v19  ;;  %v1823_v19 = vld [vmem:[#allocation2 + $0x2c8] sm:$0xff] }
 0x373   :  { %v591_v53 = vsel %vm588_vm7, %v590_v51, %v586_v52 }
 0x374   :  { %v593_v54 = vmul.f32 0.9, %v591_v53  ;;  %v1809_v53 = vld [vmem:[#allocation2 + $0x258] sm:$0xff] }
 0x375   :  { %1027 = vmatpush.bf16.msra.mxu1 %v1809_v53 }
 0x376   :  { %v594_v57 = vadd.f32 0.1, %v593_v54  ;;  %935 = vmatpush.bf16.msrb.mxu0 %v1801_v21  ;;  %v1808_v54 = vld [vmem:[#allocation2 + $0x250] sm:$0xff]  ;;  %v1822_v21 = vld [vmem:[#allocation2 + $0x2c0] sm:$0xff] }
 0x378   :  { %1517 = vst [vmem:[%s2052_s6 + $0x2] sm:$0x3] %v594_v57  ;;  %v599_v58 = vmul.f32 %v598_v55, %v594_v57  ;;  %v1807_v55 = vld [vmem:[#allocation2 + $0x248] sm:$0xff]  ;;  %v1806_v57 = vld [vmem:[#allocation2 + $0x240] sm:$0xff] }
 0x379   :  { %1028 = vmatpush.bf16.msra.mxu1 %v1808_v54 }
 0x37a   :  { %v600_v59 = vadd.f32 %v599_v58, %v491_v34  ;;  %936 = vmatpush.bf16.msrb.mxu0 %v1800_v22  ;;  %v1821_v58 = vld [vmem:[#allocation2 + $0x2b8] sm:$0xff] }
 0x37b   :  { %1115 = vmatpush.bf16.msra.mxu2 %v1821_v58 }
 0x37c   :  { %v601_v60 = vpack.c.bf16 %v600_v59, %v600_v59  ;;  %v1829_v59 = vld [vmem:[#allocation2 + $0x2f8] sm:$0xff] }
 0x37d   :  { %1029 = vmatpush.bf16.msra.mxu1 %v1807_v55 }
 0x37e   :  { %675 = vmatmul.bf16.vlgmr.msrb.gmra.mxu2 %v601_v60  ;;  %937 = vmatpush.bf16.msrb.mxu0 %v1799_v24 }
 0x37f   :  { %1116 = vmatpush.bf16.msra.mxu2 %v1820_v61 }
 0x381   :  { %1030 = vmatpush.bf16.msra.mxu1 %v1806_v57 }
 0x382   :  { %938 = vmatpush.bf16.msrb.mxu0 %v1798_v25 }
 0x383   :  { %1117 = vmatpush.bf16.msra.mxu2 %v1819_v0 }
 0x387   :  { %1118 = vmatpush.bf16.msra.mxu2 %v1818_v4 }
 0x401   :  { %v676_v3 = vpop.f32.mrf.mxu2 }
 0x402   :  { %1554 = vmatpush.msk.msrb.mxu3 %vm719_vm11, %v676_v3 }
 0x403   :  { %1555 = vmatmul.msk.f32.vlgmr.msrb.gmra.mxu3 %vm706_vm12, %v1550_v1  ;;  %v1827_v1 = vld [vmem:[#allocation2 + $0x2e8] sm:$0xff] }
 0x404   :  { %833 = vmatpush.bf16.msra.mxu3 %v1797_v2 }
 0x408   :  { %834 = vmatpush.bf16.msra.mxu3 %v1796_v49 }
 0x409   :  { %v678_v7 = vpop.f32.mrf.mxu2 }
 0x40b   :  { %1556 = vmatmul.msk.f32.gmra.mxu3 %vm706_vm12, %v1551_v5  ;;  %v1826_v5 = vld [vmem:[#allocation2 + $0x2e0] sm:$0xff] }
 0x40c   :  { %835 = vmatpush.bf16.msra.mxu3 %v1795_v6 }
 0x410   :  { %836 = vmatpush.bf16.msra.mxu3 %v1794_v8 }
 0x413   :  { %1557 = vmatmul.msk.f32.gmra.mxu3 %vm706_vm12, %v1552_v10 }
 0x414   :  { %837 = vmatpush.bf16.msra.mxu3 %v1793_v11 }
 0x418   :  { %838 = vmatpush.bf16.msra.mxu3 %v1792_v12 }
 0x41b   :  { %1558 = vmatmul.msk.f32.gmra.mxu3 %vm706_vm12, %v1553_v13 }
 0x41c   :  { %839 = vmatpush.bf16.msra.mxu3 %v1791_v14 }
 0x420   :  { %840 = vmatpush.bf16.msra.mxu3 %v1790_v15 }
 0x423   :  { %841 = vmatmul.bf16.vlgmr.msra.gmra.mxu3 %v1788_v45  ;;  %v1817_v45 = vld [vmem:[#allocation2 + $0x298] sm:$0xff] }
 0x424   :  { %1205 = vmatpush.bf16.msrb.mxu3 %v1829_v59  ;;  %1119 = vmatpush.bf16.msra.mxu2 %v1817_v45 }
 0x428   :  { %1206 = vmatpush.bf16.msrb.mxu3 %v1828_v62  ;;  %1120 = vmatpush.bf16.msra.mxu2 %v1816_v17 }
 0x42c   :  { %1207 = vmatpush.bf16.msrb.mxu3 %v1827_v1  ;;  %1121 = vmatpush.bf16.msra.mxu2 %v1815_v56 }
 0x430   :  { %1208 = vmatpush.bf16.msrb.mxu3 %v1826_v5 }
 0x433   :  { %846 = vmatmul.bf16.gmra.mxu3 %v1789_v16  ;;  %v1825_v16 = vld [vmem:[#allocation2 + $0x2d8] sm:$0xff] }
 0x434   :  { %1209 = vmatpush.bf16.msrb.mxu3 %v1825_v16 }
 0x438   :  { %1210 = vmatpush.bf16.msrb.mxu3 %v1824_v18 }
 0x43c   :  { %1211 = vmatpush.bf16.msrb.mxu3 %v1823_v19 }
 0x440   :  { %1212 = vmatpush.bf16.msrb.mxu3 %v1822_v21 }
 0x486   :  { %v740_v20 = vpop.f32.mrf.mxu3 }
 0x48e   :  { %v743_v23 = vpop.f32.mrf.mxu3 }
 0x496   :  { %v746_v26 = vpop.f32.mrf.mxu3 }
 0x49e   :  { %v749_v27 = vpop.f32.mrf.mxu3 }
 0x4a6   :  { %v842_v28 = vpop.f32.mrf.mxu3 }
 0x4a7   :  { %v843_v31 = vadd.f32 %v842_v28, %v740_v20  ;;  %v1814_v20 = vld [vmem:[#allocation2 + $0x280] sm:$0xff] }
 0x4a8   :  { %1122 = vmatpush.bf16.msra.mxu2 %v1814_v20 }
 0x4a9   :  { %v854_v35 = vadd.f32 %v1840_v32, %v843_v31 }
 0x4ab   :  { %v858_v39 = vmax.f32 %v854_v35, 0.0 }
 0x4ae   :  { %v844_v34 = vpop.f32.mrf.mxu3 }
 0x4af   :  { %v845_v36 = vadd.f32 %v844_v34, %v743_v23  ;;  %v1842_v23 = vld [vmem:[%s2050_s4 + $0x8] ss:$0 sm:$0xff] }
 0x4b1   :  { %v855_v37 = vadd.f32 %v1840_v32, %v845_v36 }
 0x4b3   :  { %v859_v40 = vmax.f32 %v855_v37, 0.0  ;;  %v1843_v37 = vld [vmem:[%s2050_s4 + $0x9] ss:$0 sm:$0xff] }
 0x4b5   :  { %v862_v41 = vpack.c.bf16 %v859_v40, %v858_v39 }
 0x4b6   :  { %v847_v42 = vpop.f32.mrf.mxu3 }
 0x4b7   :  { %939 = vmatmul.bf16.vlgmr.msrb.gmra.mxu0 %v862_v41  ;;  %v848_v43 = vadd.f32 %v847_v42, %v746_v26 }
 0x4b9   :  { %v856_v46 = vadd.f32 %v1840_v32, %v848_v43 }
 0x4bb   :  { %v860_v50 = vmax.f32 %v856_v46, 0.0 }
 0x4be   :  { %v849_v44 = vpop.f32.mrf.mxu3 }
 0x4bf   :  { %v850_v47 = vadd.f32 %v849_v44, %v749_v27 }
 0x4c1   :  { %v857_v48 = vadd.f32 %v1840_v32, %v850_v47 }
 0x4c3   :  { %v861_v51 = vmax.f32 %v857_v48, 0.0 }
 0x4c5   :  { %v863_v52 = vpack.c.bf16 %v861_v51, %v860_v50 }
 0x4c7   :  { %944 = vmatmul.bf16.gmra.mxu0 %v863_v52 }
 0x534   :  { %v940_v60 = vpop.f32.mrf.mxu0 }
 0x535   :  { %v941_v2 = vadd.f32 %v1841_v63, %v940_v60 }
 0x537   :  { %v950_v6 = vmax.f32 %v941_v2, 0.0 }
 0x53c   :  { %v942_v3 = vpop.f32.mrf.mxu0 }
 0x53d   :  { %v943_v49 = vadd.f32 %v1841_v63, %v942_v3 }
 0x53f   :  { %v951_v7 = vmax.f32 %v943_v49, 0.0 }
 0x541   :  { %v954_v8 = vpack.c.bf16 %v951_v7, %v950_v6 }
 0x543   :  { %1031 = vmatmul.bf16.vlgmr.msra.gmra.mxu1 %v954_v8 }
 0x544   :  { %v945_v9 = vpop.f32.mrf.mxu0 }
 0x545   :  { %v946_v10 = vadd.f32 %v1841_v63, %v945_v9 }
 0x547   :  { %v952_v13 = vmax.f32 %v946_v10, 0.0 }
 0x54c   :  { %v947_v11 = vpop.f32.mrf.mxu0 }
 0x54d   :  { %v948_v12 = vadd.f32 %v1841_v63, %v947_v11 }
 0x54f   :  { %v953_v14 = vmax.f32 %v948_v12, 0.0 }
 0x551   :  { %v955_v15 = vpack.c.bf16 %v953_v14, %v952_v13 }
 0x553   :  { %1036 = vmatmul.bf16.gmra.mxu1 %v955_v15 }
 0x5c0   :  { %v1032_v22 = vpop.f32.mrf.mxu1 }
 0x5c1   :  { %v1033_v24 = vadd.f32 %v1842_v23, %v1032_v22 }
 0x5c3   :  { %v1042_v27 = vmax.f32 %v1033_v24, 0.0 }
 0x5c8   :  { %v1034_v25 = vpop.f32.mrf.mxu1 }
 0x5c9   :  { %v1035_v26 = vadd.f32 %v1842_v23, %v1034_v25 }
 0x5cb   :  { %v1043_v28 = vmax.f32 %v1035_v26, 0.0 }
 0x5cd   :  { %v1046_v29 = vpack.c.bf16 %v1043_v28, %v1042_v27 }
 0x5cf   :  { %1123 = vmatmul.bf16.vlgmr.msra.gmra.mxu2 %v1046_v29  ;;  %1213 = vmatmul.bf16.vlgmr.msrb.gmra.mxu3 %v1046_v29 }
 0x5d0   :  { %v1037_v30 = vpop.f32.mrf.mxu1 }
 0x5d1   :  { %v1038_v31 = vadd.f32 %v1842_v23, %v1037_v30 }
 0x5d3   :  { %v1044_v34 = vmax.f32 %v1038_v31, 0.0 }
 0x5d8   :  { %v1039_v32 = vpop.f32.mrf.mxu1 }
 0x5d9   :  { %v1040_v33 = vadd.f32 %v1842_v23, %v1039_v32 }
 0x5db   :  { %v1045_v35 = vmax.f32 %v1040_v33, 0.0 }
 0x5dd   :  { %v1047_v36 = vpack.c.bf16 %v1045_v35, %v1044_v34 }
 0x5df   :  { %1128 = vmatmul.bf16.gmra.mxu2 %v1047_v36  ;;  %1218 = vmatmul.bf16.gmra.mxu3 %v1047_v36 }
 0x652   :  { %v1124_v39 = vpop.f32.mrf.mxu2  ;;  %v1214_v40 = vpop.f32.mrf.mxu3 }
 0x653   :  { %v1125_v41 = vadd.f32 %v1843_v37, %v1124_v39  ;;  %v1215_v42 = vadd.f32 %v1844_v38, %v1214_v40 }
 0x655   :  { %1134 = vst [vmem:[%s2051_s5] sm:$0xff] %v1125_v41  ;;  %v1236_v43 = vand.u32 2147483647, %v1215_v42  ;;  %v1224_v13 = vmax.f32 %v1215_v42, 0.0  ;;  %vm1228_vm7 = vcmp.ne.f32.partialorder %v1215_v42, %v1215_v42 }
 0x657   :  { %v1240_v44 = vsub.f32 0.0, %v1236_v43 }
 0x659   :  { %v1244_v46 = vmul.f32 1.442695, %v1240_v44 }
 0x65a   :  { %v1126_v47 = vpop.f32.mrf.mxu2  ;;  %v1216_v48 = vpop.f32.mrf.mxu3 }
 0x65b   :  { %1849 = vpow2.f32 %v1244_v46  ;;  %v1127_v50 = vadd.f32 %v1843_v37, %v1126_v47  ;;  %v1217_v51 = vadd.f32 %v1844_v38, %v1216_v48 }
 0x65d   :  { %1135 = vst [vmem:[%s2051_s5 + $0x8] sm:$0xff] %v1127_v50  ;;  %v1237_v52 = vand.u32 2147483647, %v1217_v51  ;;  %v1225_v28 = vmax.f32 %v1217_v51, 0.0  ;;  %vm1229_vm9 = vcmp.ne.f32.partialorder %v1217_v51, %v1217_v51 }
 0x65f   :  { %v1241_v53 = vsub.f32 0.0, %v1237_v52 }
 0x661   :  { %v1850_v54 = vpop.eup %1849  ;;  %v1246_v55 = vmul.f32 1.442695, %v1241_v53 }
 0x662   :  { %v1252_v57 = vadd.f32 1.0, %v1850_v54  ;;  %v1255_v58 = vmul.f32 -0.5, %v1850_v54  ;;  %v1129_v59 = vpop.f32.mrf.mxu2  ;;  %v1219_v60 = vpop.f32.mrf.mxu3  ;;  %v1258_v2 = vand.u32 2147483647, %v1850_v54 }
 0x663   :  { %1851 = vpow2.f32 %v1246_v55  ;;  %v1130_v61 = vadd.f32 %v1843_v37, %v1129_v59  ;;  %v2014_v62 = vadd.f32 %v1844_v38, %v1219_v60 }
 0x664   :  { %1853 = vlog2.f32 %v1252_v57  ;;  %v1256_v0 = vadd.f32 1.0, %v1255_v58  ;;  %vm1259_vm6 = vcmp.lt.f32.partialorder %v1258_v2, 0.0004427343 }
 0x665   :  { %1136 = vst [vmem:[%s2051_s5 + $0x10] sm:$0xff] %v1130_v61  ;;  %v1238_v63 = vand.u32 2147483647, %v2014_v62  ;;  %vm1230_vm11 = vcmp.ne.f32.partialorder %v2014_v62, %v2014_v62 }
 0x666   :  { %v1257_v5 = vmul.f32 %v1850_v54, %v1256_v0 }
 0x667   :  { %v1242_v1 = vsub.f32 0.0, %v1238_v63 }
 0x669   :  { %v1852_v3 = vpop.eup %1851  ;;  %v1248_v49 = vmul.f32 1.442695, %v1242_v1 }
 0x66a   :  { %v1854_v4 = vpop.eup %1853  ;;  %v1261_v6 = vadd.f32 1.0, %v1852_v3  ;;  %v1264_v7 = vmul.f32 -0.5, %v1852_v3  ;;  %v1131_v8 = vpop.f32.mrf.mxu2  ;;  %v1267_v56 = vand.u32 2147483647, %v1852_v3 }
 0x66b   :  { %v1221_v9 = vpop.f32.mrf.mxu3  ;;  %v1254_v10 = vmul.f32 0.6931472, %v1854_v4  ;;  %1855 = vpow2.f32 %v1248_v49  ;;  %v1132_v11 = vadd.f32 %v1843_v37, %v1131_v8 }
 0x66c   :  { %v2020_v12 = vadd.f32 %v1844_v38, %v1221_v9  ;;  %1857 = vlog2.f32 %v1261_v6  ;;  %v1265_v16 = vadd.f32 1.0, %v1264_v7  ;;  %vm1268_vm8 = vcmp.lt.f32.partialorder %v1267_v56, 0.0004427343 }
 0x66d   :  { %v1260_v14 = vsel %vm1259_vm6, %v1257_v5, %v1254_v10  ;;  %1137 = vst [vmem:[%s2051_s5 + $0x18] sm:$0xff] %v1132_v11 }
 0x66e   :  { %v1239_v15 = vand.u32 2147483647, %v2020_v12  ;;  %v1288_v45 = vadd.f32 %v1260_v14, %v1224_v13  ;;  %v1266_v23 = vmul.f32 %v1852_v3, %v1265_v16  ;;  %v1227_v55 = vmax.f32 %v2020_v12, 0.0 }
 0x66f   :  { %vm1231_vm13 = vcmp.ne.f32.partialorder %v2020_v12, %v2020_v12 }
 0x670   :  { %v1243_v17 = vsub.f32 0.0, %v1239_v15  ;;  %v1292_v18 = vsel %vm1228_vm7, %v1215_v42, %v1288_v45  ;;  %v1226_v42 = vmax.f32 %v2014_v62, 0.0 }
 0x671   :  { %v1856_v19 = vpop.eup %1855  ;;  %v1296_v20 = vmul.f32 0.9, %v1292_v18 }
 0x672   :  { %v1250_v21 = vmul.f32 1.442695, %v1243_v17  ;;  %v1858_v22 = vpop.eup %1857  ;;  %v1270_v24 = vadd.f32 1.0, %v1856_v19  ;;  %v1273_v27 = vmul.f32 -0.5, %v1856_v19  ;;  %v1276_v33 = vand.u32 2147483647, %v1856_v19 }
 0x673   :  { %v1300_v25 = vadd.f32 0.1, %v1296_v20  ;;  %v1263_v26 = vmul.f32 0.6931472, %v1858_v22 }
 0x674   :  { %1859 = vpow2.f32 %v1250_v21  ;;  %v1274_v31 = vadd.f32 1.0, %v1273_v27  ;;  %vm1277_vm10 = vcmp.lt.f32.partialorder %v1276_v33, 0.0004427343 }
 0x675   :  { %1861 = vlog2.f32 %v1270_v24  ;;  %1727 = vst [vmem:[%s2051_s5 + $0x20] sm:$0xff] %v1300_v25  ;;  %v1269_v29 = vsel %vm1268_vm8, %v1266_v23, %v1263_v26 }
 0x676   :  { %v1289_v30 = vadd.f32 %v1269_v29, %v1225_v28  ;;  %v1275_v40 = vmul.f32 %v1856_v19, %v1274_v31 }
 0x678   :  { %v1293_v32 = vsel %vm1229_vm9, %v1217_v51, %v1289_v30 }
 0x679   :  { %v1297_v35 = vmul.f32 0.9, %v1293_v32 }
 0x67a   :  { %v1860_v34 = vpop.eup %1859 }
 0x67b   :  { %v1862_v36 = vpop.eup %1861  ;;  %v1279_v37 = vadd.f32 1.0, %v1860_v34  ;;  %v1301_v38 = vadd.f32 0.1, %v1297_v35  ;;  %v1282_v41 = vmul.f32 -0.5, %v1860_v34  ;;  %v1285_v48 = vand.u32 2147483647, %v1860_v34 }
 0x67c   :  { %v1272_v39 = vmul.f32 0.6931472, %v1862_v36 }
 0x67d   :  { %1863 = vlog2.f32 %v1279_v37  ;;  %1728 = vst [vmem:[%s2051_s5 + $0x28] sm:$0xff] %v1301_v38  ;;  %v1283_v46 = vadd.f32 1.0, %v1282_v41  ;;  %vm1286_vm12 = vcmp.lt.f32.partialorder %v1285_v48, 0.0004427343 }
 0x67e   :  { %v1278_v43 = vsel %vm1277_vm10, %v1275_v40, %v1272_v39 }
 0x67f   :  { %v1290_v44 = vadd.f32 %v1278_v43, %v1226_v42  ;;  %v1284_v54 = vmul.f32 %v1860_v34, %v1283_v46 }
 0x681   :  { %v1294_v47 = vsel %vm1230_vm11, %v2014_v62, %v1290_v44 }
 0x682   :  { %v1298_v50 = vmul.f32 0.9, %v1294_v47 }
 0x683   :  { %v1864_v51 = vpop.eup %1863 }
 0x684   :  { %v1302_v52 = vadd.f32 0.1, %v1298_v50  ;;  %v1281_v53 = vmul.f32 0.6931472, %v1864_v51 }
 0x686   :  { %1729 = vst [vmem:[%s2051_s5 + $0x30] sm:$0xff] %v1302_v52  ;;  %v1287_v57 = vsel %vm1286_vm12, %v1284_v54, %v1281_v53 }
 0x687   :  { %v1291_v58 = vadd.f32 %v1287_v57, %v1227_v55 }
 0x689   :  { %v1295_v59 = vsel %vm1231_vm13, %v2020_v12, %v1291_v58 }
 0x68a   :  { %v1299_v60 = vmul.f32 0.9, %v1295_v59 }
 0x68c   :  { %v1303_v61 = vadd.f32 0.1, %v1299_v60 }
 0x68e   :  { %1730 = vst [vmem:[%s2051_s5 + $0x38] sm:$0xff] %v1303_v61 }
 0x68f   :  { %1317 = vsyncpa [#allocation3], 1 }

</bundles_post_ra>
